<compile_context>
chip_gen: v6e
topology: v6e:2x2x1
jax: 0.10.0
libtpu: 0.0.40
codegen_flags: <defaults>
</compile_context>

<pallas_src>
import functools

import jax
import jax.numpy as jnp
from jax.experimental import pallas as pl
from jax.experimental.pallas import tpu as pltpu


_COMPUTE_DTYPE = jnp.bfloat16   # jnp.float32 => exact f32 numerics (still mem-bound)


# ----------------------------- kernel body -----------------------------------
def _expand_kernel(x_ref, w_ref, b_ref, o_ref):
    # (tr, g*Cin) @ (g*Cin, g*K) on the MXU, f32 accumulate, + bias row.
    x = x_ref[...].astype(_COMPUTE_DTYPE)          # VPU cast; input stays f32 in HBM
    acc = jnp.dot(x, w_ref[...], preferred_element_type=jnp.float32)
    # NOTE: emitting bf16 here would halve the dominant HBM write if bf16 logits
    # are acceptable downstream; keep f32 to match the PyTorch module.
    o_ref[...] = (acc + b_ref[...]).astype(o_ref.dtype)


# ----------------------------- planning helpers -------------------------------
def _round_up(v, m):
    return -(-v // m) * m


def _vmem_capacity_bytes():
    try:
        cap = int(getattr(pltpu.get_tpu_info(), "vmem_capacity_bytes", 0))
        if cap > 0:
            return cap
    except Exception:
        pass
    return 64 * 1024 * 1024          # conservative fallback (v7x per-TC VMEM)


def _is_v5e():
    try:
        kind = jax.devices()[0].device_kind.lower()
        return ("v5 lite" in kind) or ("v5e" in kind) or ("v5litepod" in kind)
    except Exception:
        return False


def _pick_g(K, Cin, W, p, max_g, weight_budget_bytes):
    """How many W-tokens to pack per kernel row.

    Preference: unmasked 128-lane stores (g*K % 128 == 0) > minimal W padding >
    256-wide MXU tiles > longer (token, kw) runs for the final row shuffle (up
    to 32 lanes), after which smaller g (less block-diagonal MAC waste) wins.
    """
    best, best_key = 1, None
    for g in range(1, max_g + 1):
        if (g * Cin) * (g * K) * 2 > weight_budget_bytes:
            break                                     # weight grows as g^2
        w_pad = _round_up(W, g)
        if (w_pad - W) * 4 > W:                       # >25% padded work: never worth it
            continue
        key = ((g * K) % 128 == 0, -(w_pad - W), (g * K) % 256 == 0,
               min(g * p, 32), -g)
        if best_key is None or key > best_key:
            best, best_key = g, key
    return best


def _pick_row_tile(n_rows, per_row_bytes, resident_bytes, budget_bytes):
    """Largest 16-row-aligned tile that fits the budget, with enough grid steps."""
    avail = max(budget_bytes - resident_bytes, 16 * per_row_bytes)
    tr = int(avail // per_row_bytes)
    tr = max(16, min(tr, 2048))
    if n_rows >= 32:                                  # >=2 steps: megacore + overlap
        tr = min(tr, _round_up(-(-n_rows // 2), 16))
    if -(-n_rows // 8) >= 256:                        # >=8 steps (>=4/TC on v7x) if tiles stay big
        tr = min(tr, _round_up(-(-n_rows // 8), 16))
    tr = min(tr, _round_up(n_rows, 16))
    return max(16, (tr // 16) * 16)


# ----------------------------- public wrapper ---------------------------------
@functools.partial(jax.jit, static_argnums=(3,))
def final_patch_expanding_pallas(x, weight, bias, patch_size):
    """
    x      : (B, D, H, W, Cin)              float32
    weight : (Cin, num_class, p, p, p)      float32 (ConvTranspose3d layout)
    bias   : (num_class,)                   float32
    returns: (B, num_class, D*p, H*p, W*p)  float32
    """
    B, D, H, W, Cin = x.shape
    p = int(patch_size)
    num_class = weight.shape[1]
    K = num_class * p * p * p

    vmem_cap = _vmem_capacity_bytes()
    budget = min(int(0.45 * vmem_cap), 64 << 20)
    max_g = 4 if _is_v5e() else 8                     # bound kron MAC waste (v5e ridge is low)
    g = _pick_g(K, Cin, W, p, max_g, weight_budget_bytes=min(budget // 4, 8 << 20))

    Gc, GK = g * Cin, g * K
    W_pad = _round_up(W, g)
    Wc = W_pad // g
    R = B * D * H * Wc

    # ---- tiny trace-time operand prep (XLA on the small weight/bias) ----
    w2 = weight.reshape(Cin, K)                                    # cols (o, kd, kh, kw)
    wbd = jnp.kron(jnp.eye(g, dtype=w2.dtype), w2)                 # (g*Cin, g*K), cols (j, o, kd, kh, kw)
    wbd = wbd.reshape(Gc, g, num_class, p, p, p)
    wbd = wbd.transpose(0, 2, 3, 4, 1, 5).reshape(Gc, GK)          # cols (o, kd, kh, j, kw)
    wbd = wbd.astype(_COMPUTE_DTYPE)
    b_row = jnp.repeat(bias, p * p * g * p).reshape(1, GK).astype(jnp.float32)

    if W_pad != W:
        x = jnp.pad(x, ((0, 0), (0, 0), (0, 0), (0, W_pad - W), (0, 0)))
    xp = x.reshape(R, Gc)              # f32, rows (b, d, h, wc), row layout (token j, c)

    # ---- chip-aware tile sizing + VMEM limit ----
    weight_bytes = Gc * GK * jnp.dtype(_COMPUTE_DTYPE).itemsize    # single-buffered
    bias_bytes = GK * 4
    per_row = 2 * 4 * (Gc + GK)        # double-buffered f32 input row + f32 output row
    tr = _pick_row_tile(R, per_row, weight_bytes + bias_bytes, budget)
    footprint = weight_bytes + bias_bytes + tr * per_row
    vmem_limit = min(int(0.9 * vmem_cap), max(32 << 20, footprint + (8 << 20)))

    out2 = pl.pallas_call(
        _expand_kernel,
        out_shape=jax.ShapeDtypeStruct((R, GK), jnp.float32),
        grid_spec=pltpu.PrefetchScalarGridSpec(
            num_scalar_prefetch=0,
            grid=(pl.cdiv(R, tr),),                    # ragged last block is masked
            in_specs=[
                pl.BlockSpec((tr, Gc), lambda i: (i, 0)),
                pl.BlockSpec((Gc, GK), lambda i: (0, 0),
                             pipeline_mode=pl.Buffered(1)),   # resident weight, 1 copy
                pl.BlockSpec((1, GK), lambda i: (0, 0),
                             pipeline_mode=pl.Buffered(1)),   # resident bias row
            ],
            out_specs=pl.BlockSpec((tr, GK), lambda i: (i, 0)),
        ),
        compiler_params=pltpu.CompilerParams(
            dimension_semantics=("parallel",),
            vmem_limit_bytes=vmem_limit,
        ),
    )(xp, wbd, b_row)

    # ---- minor-dim-preserving unpack: (token, kw) runs of length g*p move as units ----
    # TODO(synk): fully fusing this scatter via out_specs (5-D output blocks) is blocked by
    # the (8,128) trailing-block-dim constraint at small patch sizes; kept as a cheap XLA
    # row shuffle whose minor contiguous run is g*p (== W_pad*p when one chunk covers W).
    y = out2.reshape(B, D, H, Wc, num_class, p, p, g, p)
    y = y.transpose(0, 4, 1, 5, 2, 6, 3, 7, 8)         # (B, nc, D, kd, H, kh, Wc, j, kw)
    y = y.reshape(B, num_class, D * p, H * p, W_pad * p)
    if W_pad != W:
        y = y[..., : W * p]
    return y


# ----------------------------- reference + test -------------------------------
def _reference(x, weight, bias, patch_size):
    """Pure-JAX f32 reference of the same math (stride==kernel conv transpose)."""
    B, D, H, W, Cin = x.shape
    p = patch_size
    num_class = weight.shape[1]
    y = jnp.einsum("bdhwc,cokmn->bdhwokmn", x, weight)
    y = y + bias[None, None, None, None, :, None, None, None]
    y = y.transpose(0, 4, 1, 5, 2, 6, 3, 7)
    return y.reshape(B, num_class, D * p, H * p, W * p)


if __name__ == "__main__":
    # Small, deterministic configuration.
    B, D, H, W = 2, 4, 4, 4
    dim = 32            # input embedding dim
    num_class = 4
    patch_size = 2

    key = jax.random.PRNGKey(0)
    kx, kw, kb = jax.random.split(key, 3)

    # Input in the module's expected layout: (B, D, H, W, C)
    x = jax.random.normal(kx, (B, D, H, W, dim), dtype=jnp.float32)

    # ConvTranspose3d parameter shapes: weight (in, out, kD, kH, kW), bias (out,)
    weight = 0.05 * jax.random.normal(
        kw, (dim, num_class, patch_size, patch_size, patch_size), dtype=jnp.float32
    )
    bias = 0.1 * jax.random.normal(kb, (num_class,), dtype=jnp.float32)

    out = final_patch_expanding_pallas(x, weight, bias, patch_size)
    out = jax.block_until_ready(out)

    ref = _reference(x, weight, bias, patch_size)
    assert out.shape == (B, num_class, D * patch_size, H * patch_size, W * patch_size)
    # bf16 MXU inputs with f32 accumulate -> loosened tolerance (documented precision mode).
    err = float(jnp.max(jnp.abs(out - ref)))
    assert jnp.allclose(out, ref, atol=2e-2, rtol=2e-2), err

    print("KERNEL_OK")
</pallas_src>

<mosaic_0001>
module attributes {stable_mosaic.version = 11 : i64} {
  func.func @_expand_kernel(%arg0: i32, %arg1: memref<16x128xf32, #tpu.memory_space<vmem>>, %arg2: memref<128x128xbf16, #tpu.memory_space<vmem>>, %arg3: memref<1x128xf32, #tpu.memory_space<vmem>>, %arg4: memref<16x128xf32, #tpu.memory_space<vmem>>) attributes {dimension_semantics = [#tpu.dimension_semantics<parallel>], iteration_bounds = array<i64: 2>, scalar_prefetch = 0 : i64, scratch_operands = 0 : i64, tpu.core_type = #tpu.core_type<tc>, window_params = [{transform_indices = @transform_0, window_bounds = array<i64: 16, 128>}, {pipeline_mode = #tpu.pipeline_mode<synchronous>, transform_indices = @transform_1, window_bounds = array<i64: 128, 128>}, {pipeline_mode = #tpu.pipeline_mode<synchronous>, transform_indices = @transform_2, window_bounds = array<i64: 1, 128>}, {transform_indices = @transform_3, window_bounds = array<i64: 16, 128>}]} {
    %c0 = arith.constant 0 : index
    %c0_0 = arith.constant 0 : index
    %0 = vector.load %arg1[%c0, %c0_0] : memref<16x128xf32, #tpu.memory_space<vmem>>, vector<16x128xf32>
    %1 = arith.truncf %0 : vector<16x128xf32> to vector<16x128xbf16>
    %c0_1 = arith.constant 0 : index
    %c0_2 = arith.constant 0 : index
    %2 = vector.load %arg2[%c0_1, %c0_2] : memref<128x128xbf16, #tpu.memory_space<vmem>>, vector<128x128xbf16>
    %cst = arith.constant dense<0.000000e+00> : vector<16x128xf32>
    %3 = tpu.matmul %1, %2, %cst {dimension_numbers = #tpu.dot_dimension_numbers<[1], [0], [0], [1], [0, 0, 1, 1], [], []>} : vector<16x128xbf16>, vector<128x128xbf16>, vector<16x128xf32> -> vector<16x128xf32>
    %c0_3 = arith.constant 0 : index
    %c0_4 = arith.constant 0 : index
    %4 = vector.load %arg3[%c0_3, %c0_4] : memref<1x128xf32, #tpu.memory_space<vmem>>, vector<1x128xf32>
    %5 = vector.broadcast %4 : vector<1x128xf32> to vector<16x128xf32>
    %6 = arith.addf %3, %5 : vector<16x128xf32>
    %c0_5 = arith.constant 0 : index
    %c0_6 = arith.constant 0 : index
    %7 = vector.load %arg4[%c0_5, %c0_6] : memref<16x128xf32, #tpu.memory_space<vmem>>, vector<16x128xf32>
    tpu.vector_store %arg4[%c0_5, %c0_6], %6 {strides = array<i32>} : memref<16x128xf32, #tpu.memory_space<vmem>>, vector<16x128xf32>,
    return
  }
  func.func @transform_0(%arg0: i32) -> (i32, i32) {
    %c0_i32 = arith.constant 0 : i32
    %c0_i32_0 = arith.constant 0 : i32
    return %arg0, %c0_i32 : i32, i32
  }
  func.func @transform_1(%arg0: i32) -> (i32, i32) {
    %c0_i32 = arith.constant 0 : i32
    %c0_i32_0 = arith.constant 0 : i32
    %c0_i32_1 = arith.constant 0 : i32
    return %c0_i32, %c0_i32_0 : i32, i32
  }
  func.func @transform_2(%arg0: i32) -> (i32, i32) {
    %c0_i32 = arith.constant 0 : i32
    %c0_i32_0 = arith.constant 0 : i32
    %c0_i32_1 = arith.constant 0 : i32
    return %c0_i32, %c0_i32_0 : i32, i32
  }
  func.func @transform_3(%arg0: i32) -> (i32, i32) {
    %c0_i32 = arith.constant 0 : i32
    %c0_i32_0 = arith.constant 0 : i32
    return %arg0, %c0_i32 : i32, i32
  }
}

</mosaic_0001>

<bundles_post_ra>
// kernel: final_patch_expanding_pallas.1
= control target key start
LH: loop header
LB: loop body
LE: loop exit
PB: predicated region body
PF: predicated region fallthrough
CT: control target
= control target key end

     0   :  { %s445_s12 = smov 0   ;;  %s489_s0 = inlined_call_operand.vmem [shape: f32[32,128], index: 0, kind: input, shape index: {}]   ;;  %s490_s1 = inlined_call_operand.vmem [shape: bf16[128,128], index: 1, kind: input, shape index: {}]   ;;  %s491_s2 = inlined_call_operand.vmem [shape: f32[1,128], index: 2, kind: input, shape index: {}]   ;;  %s492_s3 = inlined_call_operand.vmem [shape: f32[32,128], index: 3, kind: output, shape index: {}]  }
   0x1 LB: > { %s348_s13 = sadd.s32 4294967295, %s421_s12   ;;  %p352_p0 = scmp.ge.s32.totalorder %s421_s12, 1  ;;  %s421_s12 = sphi %s445_s12, %s13_s12  }
   0x2   : > { %p138_p1 = scmp.lt.s32.totalorder %s421_s12, 3 }
   0x4   : > { %p139_p2 = pnand %p352_p0, %p138_p1 }
   0x5   : > { %s353_s20 = sshll.u32 (!%p139_p2), %s348_s13, 1 }
   0x6   : > { %142 = sbr.rel (%p139_p2) target bundleno = 244 (0xf4), region = 32  ;;  %p163_p3 = scmp.lt.s32.totalorder (!%p139_p2), %s353_s20, 3 }
   0xb   : > { %v407_v0 = vld [vmem:[%s490_s1 + $0x38] sm:$0xff]   ;;  %v423_v1 = vmov 0.0   ;;  %v408_v2 = vld [vmem:[%s490_s1 + $0x30] sm:$0xff]   ;;  %vm424_vm0 = vmmov 0   ;;  %v409_v3 = vld [vmem:[%s490_s1 + $0x28] sm:$0xff]   ;;  %s494_s20 = smov (!%p163_p3, %s353_s20), 3 }
   0xc   : > { %377 = vmatprep.subr.bf16.mxu0 %v423_v1  ;;  %393 = vmatprep.mubr.msk.bf16.mxu0 %vm424_vm0, %v423_v1  ;;  %v410_v4 = vld [vmem:[%s490_s1 + $0x20] sm:$0xff]   ;;  %v411_v5 = vld [vmem:[%s490_s1 + $0x18] sm:$0xff]   ;;  %v412_v6 = vld [vmem:[%s490_s1 + $0x10] sm:$0xff]   ;;  %s354_s27 = sshll.u32 %s494_s20, 3 }
   0xd   : > { %378 = vmatpush3.bf16.msra.mxu0 %v407_v0  ;;  %v413_v7 = vld [vmem:[%s490_s1 + $0x8] sm:$0xff]   ;;  %s166_s5 = scalar_lea.vmem %s489_s0, %s354_s27  ;;  %v414_v8 = vld [vmem:[%s490_s1] sm:$0xff]   ;;  %s172_s13 = scalar_lea.vmem %s492_s3, %s354_s27 }
   0xe   : > { %379 = vmatprep.subr.bf16.mxu0 %v423_v1  ;;  %v175_v9 = vld [vmem:[%s166_s5] sm:$0xff]  ;;  %v176_v10 = vld [vmem:[%s166_s5 + $0x8] sm:$0xff] }
   0xf   : > { %v177_v11 = vpack.c.bf16 %v176_v10, %v175_v9  ;;  %v357_v12 = vld [vmem:[%s491_s2] ss:$0 sm:$0xff] }
  0x11   : > { %380 = vmatpush3.bf16.msra.mxu0 %v408_v2 }
  0x12   : > { %381 = vmatprep.subr.bf16.mxu0 %v423_v1 }
  0x15   : > { %382 = vmatpush3.bf16.msra.mxu0 %v409_v3 }
  0x16   : > { %383 = vmatprep.subr.bf16.mxu0 %v423_v1 }
  0x19   : > { %384 = vmatpush3.bf16.msra.mxu0 %v410_v4 }
  0x1a   : > { %385 = vmatprep.subr.bf16.mxu0 %v423_v1 }
  0x1d   : > { %386 = vmatpush3.bf16.msra.mxu0 %v411_v5 }
  0x1e   : > { %387 = vmatprep.subr.bf16.mxu0 %v423_v1 }
  0x21   : > { %388 = vmatpush3.bf16.msra.mxu0 %v412_v6 }
  0x22   : > { %389 = vmatprep.subr.bf16.mxu0 %v423_v1 }
  0x25   : > { %390 = vmatpush3.bf16.msra.mxu0 %v413_v7 }
  0x26   : > { %391 = vmatprep.subr.bf16.mxu0 %v423_v1 }
  0x29   : > { %392 = vmatpush3.bf16.msra.mxu0 %v414_v8 }
  0x2c   : > { %394 = vmatmul.mubr.bf16.vlgmr.msra.gmra.mxu0 %v177_v11 }
  0xec   : > { %v283_v13 = vpop.f32.mrf.mxu0 }
  0xed   : > { %v284_v14 = vadd.f32 %v357_v12, %v283_v13 }
  0xee   : > { %v395_v15 = vpop.f32.mrf.mxu0 }
  0xef   : > { %290 = vst [vmem:[%s172_s13] sm:$0xff] %v284_v14 }
  0xf0   : > { %v286_v16 = vpop.f32.mrf.mxu0 }
  0xf1   : > { %v287_v17 = vadd.f32 %v357_v12, %v286_v16 }
  0xf2   : > { %v396_v18 = vpop.f32.mrf.mxu0 }
  0xf3   : > { %291 = vst [vmem:[%s172_s13 + $0x8] sm:$0xff] %v287_v17 }
  0xf4 PF: > { %s13_s12 = sadd.s32 1, %s421_s12  }
  0xf5   : > { %p10_p4 = scmp.ge.s32.totalorder %s13_s12, 4  }
  0xf7   :  { %12 = sbr.rel (!%p10_p4) target bundleno = 1 (0x1), region = 62 }

</bundles_post_ra>
